<compile_context>
chip_gen: v5e
topology: v5e:2x2
jax: 0.10.0
libtpu: 0.0.40
codegen_flags: <defaults>
</compile_context>

<pallas_src>
import jax
import jax.numpy as jnp
from jax.experimental import pallas as pl
from jax.experimental.pallas import tpu as pltpu

LANE = 128
HID = 16  # hidden width of the MLP

# Slab column layout (shape (HID, 24)):
#   [:, 0:16]  W2 (16, 16)
#   [:, 16]    W1 column (16,)   -- nn.Linear(1, 16).weight[:, 0]
#   [:, 17]    b1 (16,)
#   [:, 18]    b2 (16,)
#   [:, 19]    W3 row as column  -- nn.Linear(16, 1).weight[0, :]
#   [0, 20]    b3 scalar


def mlp_kernel(x_ref, slab_ref, o_ref):
    x = x_ref[...]          # (1, TB)  batch on lanes
    slab = slab_ref[...]    # (16, 24) all weights/biases, resident across the grid

    w2 = slab[:, 0:16]      # (16, 16)
    w1 = slab[:, 16:17]     # (16, 1)
    b1 = slab[:, 17:18]     # (16, 1)
    b2 = slab[:, 18:19]     # (16, 1)
    w3 = slab[:, 19:20]     # (16, 1)
    b3 = slab[0:1, 20:21]   # (1, 1)

    # Layer 1: K=1 -> outer product as a VPU broadcast multiply (no MXU pass).
    # (Broadcast of the single-sublane x across 16 sublanes; XLU has slack here
    #  since the only other XLU user is the layer-3 sublane reduce.)
    h1 = jnp.tanh(w1 * x + b1)                                    # (16, TB)

    # Layer 2: stationary 16x16 weights on the MXU, lane-dense RHS.
    # HIGHEST precision: full-f32 MXU passes (free — MXU slot has slack vs EUP)
    # and removes the bf16-decomposition risk against the 1e-5 tolerance.
    h2 = jnp.tanh(
        jnp.dot(
            w2,
            h1,
            preferred_element_type=jnp.float32,
            precision=jax.lax.Precision.HIGHEST,
        )
        + b2
    )                                                             # (16, TB)

    # Layer 3: N=1 -> VPU weighted sum + sublane (XLU) reduce, lane-dense output.
    o_ref[...] = jnp.sum(w3 * h2, axis=0, keepdims=True) + b3     # (1, TB)


def _pack_params(params):
    """Pack (W1,b1,W2,b2,W3,b3) in PyTorch (out,in) orientation into one slab."""
    w1, b1, w2, b2, w3, b3 = params
    slab = jnp.zeros((HID, 24), jnp.float32)
    slab = slab.at[:, 0:16].set(w2)
    slab = slab.at[:, 16].set(w1[:, 0])
    slab = slab.at[:, 17].set(b1)
    slab = slab.at[:, 18].set(b2)
    slab = slab.at[:, 19].set(w3[0, :])
    slab = slab.at[0, 20].set(b3[0])
    return slab


def _device_tiling():
    """Per-generation (max tile lanes, vmem_limit_bytes).

    VMEM budget is ~320-400 B/lane (double-buffered (1,tile) in/out blocks,
    sublane-padded to 8 rows, plus (16,tile) f32 temporaries for h1/h2/x-bcast):
      * v7x : 64 MiB physical VMEM per TC -> cap 64K lanes (~20-25 MiB), 40 MiB limit.
      * v6e : 128 MiB physical            -> 128K lanes (~40-50 MiB), raise to 64 MiB.
      * v5e : 128 MiB physical but 16 MiB default scoped -> raise to 64 MiB, 128K lanes.
      * unknown: conservative 64K lanes within the 32 MiB default scoped limit.
    """
    try:
        kind = jax.devices()[0].device_kind.lower()
    except Exception:  # pragma: no cover - defensive
        kind = ""
    if "v7" in kind:
        return 64 * 1024, 40 << 20
    if "v6" in kind:
        return 128 * 1024, 64 << 20
    if "v5 lite" in kind or "v5e" in kind or "v5litepod" in kind:
        return 128 * 1024, 64 << 20
    return 64 * 1024, 32 << 20


def _xla_forward(x, params):
    """Plain XLA path for tiny batches (pallas_call overhead would dominate)."""
    w1, b1, w2, b2, w3, b3 = params
    h = jnp.tanh(x @ w1.T + b1)
    h = jnp.tanh(h @ w2.T + b2)
    return h @ w3.T + b3


def net_forward(x, params, *, tile_b=None, force_pallas=False,
                small_batch_threshold=8192):
    """Forward pass of Net. x: (B, 1) f32 -> (B, 1) f32.

    tile_b=None -> auto-pick the largest lane tile the current TPU generation's
    VMEM budget allows (then split so the grid has >= 2 steps for v7x megacore).
    """
    B, f_in = x.shape
    assert f_in == 1, "1-D regression input"

    # Small-batch bypass: at B < ~8K the whole workload is a handful of EUP
    # cycles; fixed pallas_call/grid overhead dominates, so use plain XLA.
    if (not force_pallas) and B < small_batch_threshold:
        return _xla_forward(x, params)

    slab = _pack_params(params)

    # Batch onto lanes: (B, 1) -> (1, B) is a free relabel since F_in == 1.
    xt = x.reshape(1, B)

    # Tile selection: as many lanes as the generation's VMEM budget allows,
    # lane-aligned (multiple of 128).
    max_tile, vmem_limit = _device_tiling()
    want = max_tile if tile_b is None else tile_b
    want = min(want, max_tile, B)
    tile = max(LANE, (want // LANE) * LANE)

    # Keep the grid at >= 2 steps so dimension_semantics=("parallel",) gives
    # both v7x TensorCores work; the extra ~0.35us step is noise on v5e/v6e.
    if B > LANE and pl.cdiv(B, tile) < 2:
        tile = max(LANE, ((pl.cdiv(B, 2) + LANE - 1) // LANE) * LANE)

    # Pad a ragged batch tail with zeros (garbage lanes are sliced off below).
    bp = pl.cdiv(B, tile) * tile
    if bp != B:
        xt = jnp.pad(xt, ((0, 0), (0, bp - B)))
    grid = (bp // tile,)

    out = pl.pallas_call(
        mlp_kernel,
        out_shape=jax.ShapeDtypeStruct((1, bp), jnp.float32),
        grid_spec=pltpu.PrefetchScalarGridSpec(
            num_scalar_prefetch=0,
            grid=grid,
            in_specs=[
                pl.BlockSpec((1, tile), lambda i: (0, i)),        # x (lane-tiled)
                pl.BlockSpec((HID, 24), lambda i: (0, 0)),        # weight slab
            ],
            out_specs=pl.BlockSpec((1, tile), lambda i: (0, i)),  # lane-dense out
        ),
        compiler_params=pltpu.CompilerParams(
            dimension_semantics=("parallel",),   # shard batch tiles across TCs (v7x)
            vmem_limit_bytes=vmem_limit,         # per-generation scoped-VMEM raise
        ),
    )(xt, slab)

    return out[:, :B].reshape(B, 1)


def init_params(key, layer_sizes=(1, 16, 16, 1)):
    """nn.Linear-style init: W ~ U(-1/sqrt(fan_in), 1/sqrt(fan_in)), shape (out, in)."""
    params = []
    keys = jax.random.split(key, 2 * (len(layer_sizes) - 1))
    for idx, (fi, fo) in enumerate(zip(layer_sizes[:-1], layer_sizes[1:])):
        bound = 1.0 / (fi ** 0.5)
        w = jax.random.uniform(
            keys[2 * idx], (fo, fi), jnp.float32, minval=-bound, maxval=bound
        )
        b = jax.random.uniform(
            keys[2 * idx + 1], (fo,), jnp.float32, minval=-bound, maxval=bound
        )
        params += [w, b]
    return tuple(params)


def reference_forward(x, params):
    w1, b1, w2, b2, w3, b3 = params
    h = jnp.tanh(x @ w1.T + b1)
    h = jnp.tanh(h @ w2.T + b2)
    return h @ w3.T + b3


if __name__ == "__main__":
    key = jax.random.PRNGKey(0)
    k_param, k_x = jax.random.split(key)

    layer_sizes = (1, 16, 16, 1)
    params = init_params(k_param, layer_sizes)

    # 1-D regression batch of scalar inputs: (batch, 1).
    batch = 1024
    x = jax.random.normal(k_x, (batch, layer_sizes[0]), dtype=jnp.float32)

    # Force the Pallas path (the auto-dispatcher would route B=1024 to XLA).
    out = net_forward(x, params, force_pallas=True)
    out = jax.block_until_ready(out)

    ref = reference_forward(x, params)
    assert out.shape == (batch, layer_sizes[-1])
    assert jnp.allclose(out, ref, atol=1e-5, rtol=1e-5)

    # Auto-dispatch (small batch -> XLA fast path) sanity check.
    out_auto = jax.block_until_ready(net_forward(x, params))
    assert jnp.allclose(out_auto, ref, atol=1e-5, rtol=1e-5)

    print("KERNEL_OK")
</pallas_src>

<mosaic_0001>
module attributes {stable_mosaic.version = 11 : i64} {
  func.func @mlp_kernel(%arg0: i32, %arg1: memref<1x512xf32, #tpu.memory_space<vmem>>, %arg2: memref<16x24xf32, #tpu.memory_space<vmem>>, %arg3: memref<1x512xf32, #tpu.memory_space<vmem>>) attributes {dimension_semantics = [#tpu.dimension_semantics<parallel>], iteration_bounds = array<i64: 2>, scalar_prefetch = 0 : i64, scratch_operands = 0 : i64, tpu.core_type = #tpu.core_type<tc>, window_params = [{transform_indices = @transform_0, window_bounds = array<i64: 1, 512>}, {pipeline_mode = #tpu.pipeline_mode<synchronous>, transform_indices = @transform_1, window_bounds = array<i64: 16, 24>}, {transform_indices = @transform_2, window_bounds = array<i64: 1, 512>}]} {
    %c0 = arith.constant 0 : index
    %c0_0 = arith.constant 0 : index
    %0 = vector.load %arg1[%c0, %c0_0] : memref<1x512xf32, #tpu.memory_space<vmem>>, vector<1x512xf32>
    %c0_1 = arith.constant 0 : index
    %c0_2 = arith.constant 0 : index
    %1 = vector.load %arg2[%c0_1, %c0_2] : memref<16x24xf32, #tpu.memory_space<vmem>>, vector<16x24xf32>
    %2 = vector.extract_strided_slice %1 {offsets = [0, 0], sizes = [16, 16], strides = [1, 1]} : vector<16x24xf32> to vector<16x16xf32>
    %3 = vector.extract_strided_slice %1 {offsets = [0, 16], sizes = [16, 1], strides = [1, 1]} : vector<16x24xf32> to vector<16x1xf32>
    %4 = vector.extract_strided_slice %1 {offsets = [0, 17], sizes = [16, 1], strides = [1, 1]} : vector<16x24xf32> to vector<16x1xf32>
    %5 = vector.extract_strided_slice %1 {offsets = [0, 18], sizes = [16, 1], strides = [1, 1]} : vector<16x24xf32> to vector<16x1xf32>
    %6 = vector.extract_strided_slice %1 {offsets = [0, 19], sizes = [16, 1], strides = [1, 1]} : vector<16x24xf32> to vector<16x1xf32>
    %7 = vector.extract_strided_slice %1 {offsets = [0, 20], sizes = [1, 1], strides = [1, 1]} : vector<16x24xf32> to vector<1x1xf32>
    %8 = vector.broadcast %3 : vector<16x1xf32> to vector<16x512xf32>
    %9 = vector.broadcast %0 : vector<1x512xf32> to vector<16x512xf32>
    %10 = arith.mulf %8, %9 : vector<16x512xf32>
    %11 = vector.broadcast %4 : vector<16x1xf32> to vector<16x512xf32>
    %12 = arith.addf %10, %11 : vector<16x512xf32>
    %13 = math.tanh %12 : vector<16x512xf32>
    %cst = arith.constant dense<0.000000e+00> : vector<16x512xf32>
    %14 = tpu.matmul %2, %13, %cst {dimension_numbers = #tpu.dot_dimension_numbers<[1], [0], [0], [1], [0, 0, 1, 1], [], []>, precision = #tpu.contract_precision<fp32>} : vector<16x16xf32>, vector<16x512xf32>, vector<16x512xf32> -> vector<16x512xf32>
    %15 = vector.broadcast %5 : vector<16x1xf32> to vector<16x512xf32>
    %16 = arith.addf %14, %15 : vector<16x512xf32>
    %17 = math.tanh %16 : vector<16x512xf32>
    %18 = vector.broadcast %6 : vector<16x1xf32> to vector<16x512xf32>
    %19 = arith.mulf %18, %17 : vector<16x512xf32>
    %cst_3 = arith.constant dense<0.000000e+00> : vector<512xf32>
    %20 = vector.multi_reduction <add>, %19, %cst_3 [0] : vector<16x512xf32> to vector<512xf32>
    %21 = vector.shape_cast %20 : vector<512xf32> to vector<1x512xf32>
    %22 = vector.broadcast %7 : vector<1x1xf32> to vector<1x512xf32>
    %23 = arith.addf %21, %22 : vector<1x512xf32>
    %c0_4 = arith.constant 0 : index
    %c0_5 = arith.constant 0 : index
    %24 = vector.load %arg3[%c0_4, %c0_5] : memref<1x512xf32, #tpu.memory_space<vmem>>, vector<1x512xf32>
    tpu.vector_store %arg3[%c0_4, %c0_5], %23 {strides = array<i32>} : memref<1x512xf32, #tpu.memory_space<vmem>>, vector<1x512xf32>,
    return
  }
  func.func @transform_0(%arg0: i32) -> (i32, i32) {
    %c0_i32 = arith.constant 0 : i32
    %c0_i32_0 = arith.constant 0 : i32
    return %c0_i32, %arg0 : i32, i32
  }
  func.func @transform_1(%arg0: i32) -> (i32, i32) {
    %c0_i32 = arith.constant 0 : i32
    %c0_i32_0 = arith.constant 0 : i32
    %c0_i32_1 = arith.constant 0 : i32
    return %c0_i32, %c0_i32_0 : i32, i32
  }
  func.func @transform_2(%arg0: i32) -> (i32, i32) {
    %c0_i32 = arith.constant 0 : i32
    %c0_i32_0 = arith.constant 0 : i32
    return %c0_i32, %arg0 : i32, i32
  }
}

</mosaic_0001>

<bundles_post_ra>
// kernel: tpu_custom_call.1
= control target key start
LH: loop header
LB: loop body
LE: loop exit
PB: predicated region body
PF: predicated region fallthrough
CT: control target
= control target key end

     0   :  { %7 = vsyncpa [#allocation3], 0  ;;  %s1750_s0 = inlined_call_operand.hbm [shape: f32[1,1024], index: 0, kind: input, shape index: {}]   ;;  %s1751_s1 = inlined_call_operand.hbm [shape: f32[16,24], index: 1, kind: input, shape index: {}]   ;;  %s1752_s2 = inlined_call_operand.hbm [shape: f32[1,1024], index: 2, kind: output, shape index: {}]  }
   0x1   :  { %9 = vsyncpa [#allocation3 + $0x1], 0 }
   0x2   :  { %10 = vsyncpa [#allocation6], 0 }
   0x3   :  { %11 = vsyncpa [#allocation4], 0 }
   0x4   :  { %13 = vsyncpa [#allocation4 + $0x1], 0  ;;  %s1454_s9 = smov 0   ;;  %s1456_s10 = smov 0  }
   0x5   :  { %s1458_s11 = smov 0   ;;  %s1460_s12 = smov 0  }
   0x6 LB: > { %s108_s15 = sshll.u32 %s1751_s1, 4  ;;  %s1478_s16 = sadd.s32 4294967295, %s1429_s12   ;;  %s1429_s12 = sphi %s1460_s12, %s1762_s12   ;;  %s1425_s11 = sphi %s1458_s11, %s1761_s11   ;;  %s1421_s10 = sphi %s1456_s10, %s1760_s10   ;;  %s1417_s9 = sphi %s1454_s9, %s1759_s9   ;;  %s109_s15 = int_to_ptr.hbm [resolvable:$true] %s108_s15 }
   0x7   : > { %p1183_p0 = scmp.ge.s32.totalorder %s1429_s12, 1  ;;  %p40_p1 = scmp.eq.s32.totalorder %s1478_s16, 0 }
   0x8   : > { %p97_p2 = scmp.lt.s32.totalorder %s1429_s12, 3  ;;  %s1431_s18 = smov [#allocation5]  }
   0x9   : > { %s110_s19 = sshll.u32 %s1431_s18, 4  ;;  %s1432_s20 = smov 128   ;;  %s111_s19 = int_to_ptr.vmem [resolvable:$true] %s110_s19 }
   0xa   : > { %p1483_p3 = pnand %p1183_p0, %p97_p2  ;;  %s1433_s21 = smov 8  }
   0xb   : > { %s1182_s22 = sadd.s32 4294967294, %s1429_s12   ;;  %s1494_s23 = sadd.s32 1, %s1429_s12  }
   0xc   : > { %p1204_p4 = pneg %p1483_p3  ;;  %s26_s24 = sadd.s32 1, %s1425_s11 }
   0xd   : > { %s23_s25 = ssub.s32 %s1429_s12, %s1494_s23  ;;  %p33_p7 = scmp.ne.s32.totalorder %s1425_s11, %s1421_s10 }
   0xe   : > { %p1205_p6 = pnand %p1204_p4, %p40_p1  ;;  %p24_p8 = scmp.eq.s32.totalorder %s23_s25, 0 }
   0xf   : > { %p34_p9 = scmp.eq.s32.totalorder %s1429_s12, 0  ;;  %p39_p10 = scmp.ne.s32.totalorder %s1421_s10, %s1417_s9 }
  0x10   : > { %1207 = dma.hbm_to_vmem [thread:$0]  (!%p1205_p6), %s109_s15, 256, %s111_s19, [#allocation6], %s1432_s20, %s1432_s20, %s1433_s21  }
  0x11   : > { %p84_p11 = scmp.eq.s32.totalorder %s1478_s16, 1  ;;  %p1510_p12 = por %p40_p1, %p39_p10 }
  0x12   : > { %s1506_s26 = scalar_select %p24_p8, %s1425_s11, %s26_s24  }
  0x13   : > { %p1514_p13 = por %p84_p11, %p33_p7  ;;  %p90_p0 = scmp.eq.s32.totalorder %s1182_s22, 1 }
  0x14   : > { %p35_p2 = por %p34_p9, %p33_p7  ;;  %s124_s29 = sand.u32 1, %s1425_s11  }
  0x15   : > { %p1519_p4 = por %p90_p0, %p39_p10  ;;  %p1217_p6 = scmp.lt.s32.totalorder %s1429_s12, 2 }
  0x16   : > { %s1186_s3 = sshll.u32 %s124_s29, 2  ;;  %s1187_s4 = sshll.u32 %s1429_s12, 2 }
  0x17   : > { %s132_s7 = scalar_lea.hbm %s1750_s0, %s1187_s4  ;;  %s128_s13 = scalar_lea.vmem [#allocation2], %s1186_s3 }
  0x18   : > { %s134_s8 = sshll.u32 %s132_s7, 4  ;;  %s136_s14 = sshll.u32 %s128_s13, 4  ;;  %s135_s8 = int_to_ptr.hbm [resolvable:$true] %s134_s8  ;;  %s137_s14 = int_to_ptr.vmem [resolvable:$true] %s136_s14 }
  0x19   : > { %p1528_p8 = pnand %p1217_p6, %p35_p2  ;;  %s125_s18 = scalar_lea.sflag [#allocation3], %s124_s29 }
  0x1a   : > { %s1329_s19 = sshra.s32 %s135_s8, 4  ;;  %s1336_s24 = scalar_lea.hbm %s1750_s0, 8  ;;  %s1330_s19 = int_to_ptr.hbm [resolvable:$true] %s1329_s19 }
  0x1b   : > { %s1331_s20 = scalar_lea.hbm %s1330_s19, 4  ;;  %p1333_p9 = pneg %p1528_p8 }
  0x1c   : > { %p1332_p7 = scmp.ne.s32.totalorder %s1330_s19, %s1331_s20  ;;  %p1337_p0 = scmp.lt.s32.totalorder %s1330_s19, %s1750_s0 }
  0x1d   : > { %p1338_p2 = scmp.lt.s32.totalorder %s1336_s24, %s1331_s20 }
  0x1e   : > { %p1334_p10 = pnand %p1333_p9, %p1332_p7 }
  0x1f   : > { %p1339_p6 = por %p1338_p2, %p1337_p0 }
  0x20   : > { %p1335_p11 = pneg %p1334_p10 }
  0x22   : > { %p1340_p5 = pnand %p1339_p6, %p1335_p11 }
  0x24   : > { %1343 = shalt.err (!%p1340_p5)
}
  0x25   : > { %1211 = dma.hbm_to_vmem [thread:$0]  (!%p1528_p8), %s135_s8, 64, %s137_s14, %s125_s18  }
  0x26   : > { %145 = sbr.rel (%p1483_p3) target bundleno = 447 (0x1bf), region = 28  ;;  %s1545_s29 = sand.u32 (!%p1483_p3), 1, %s1421_s10  }
  0x27   : > { %s1189_s4 = sshll.u32 (!%p1483_p3), %s1545_s29, 2  ;;  %s148_s5 = scalar_lea.sflag (!%p1483_p3), [#allocation3], %s1545_s29 }
  0x28   : > { %s151_s6 = scalar_lea.vmem (!%p1483_p3), [#allocation2], %s1189_s4 }
  0x2b   : > { %1404 = dma.done.wait (%p1510_p12), %s148_s5, 64  }
  0x2c   : > { %1406 = vsyncadd (%p1510_p12), %s148_s5, 4294967232 }
  0x2d   : > { %1408 = dma.done.wait (%p40_p1), [#allocation6], 256  }
  0x2e   : > { %1410 = vsyncadd (%p40_p1), [#allocation6], 4294967040  ;;  %v1434_v0 = vmov 17   ;;  %v1435_v1 = vmov 16   ;;  %v1559_v2 = vld [vmem:[#allocation5 + $0x8] sm:$0xff]  ;;  %v1563_v3 = vld [vmem:[#allocation5] sm:$0xff] }
  0x2f   : > { %1261 = vset.pattern.permute.xlu1 %v1434_v0  ;;  %1260 = vset.pattern.permute.xlu0 %v1435_v1  ;;  %v1567_v4 = vld [vmem:[%s151_s6] sm:$0xf]  ;;  %vm242_vm0 = vcmask 130048   ;;  %vm1074_vm1 = vcmask 1040384   ;;  %s1193_s17 = sshll.u32 %s1478_s16, 2  ;;  %vm1076_vm2 = vcmask 1042434  }
  0x30   : > { %215 = vperm.xlu1 %1261, %v1559_v2   ;;  %190 = vperm.xlu0 %1260, %v1559_v2   ;;  %v194_v5 = vperm.slane %v1567_v4, 0  ;;  %v195_v6 = vperm.slane %v1567_v4, 1  ;;  %v243_v7 = vsel %vm242_vm0, %v1563_v3, 0  ;;  %v245_v16 = vsel %vm242_vm0, %v1559_v2, 0  ;;  %s1097_s8 = scalar_lea.hbm %s1752_s2, %s1193_s17  ;;  %s177_s13 = scalar_lea.vmem [#allocation7], %s1189_s4 }
  0x31   : > { %v1574_v12 = vand.u32 4294901760, %v243_v7  ;;  %v196_v20 = vperm.slane %v1567_v4, 2  ;;  %v1583_v23 = vand.u32 4294901760, %v245_v16  ;;  %v197_v41 = vperm.slane %v1567_v4, 3  ;;  %s1099_s14 = sshll.u32 %s177_s13, 4  ;;  %s1101_s15 = sshll.u32 %s1097_s8, 4  ;;  %s1100_s14 = int_to_ptr.vmem [resolvable:$true] %s1099_s14  ;;  %s1102_s15 = int_to_ptr.hbm [resolvable:$true] %s1101_s15 }
  0x32   : > { %vm1078_vm3 = vcmask 1041408   ;;  %s1087_s16 = scalar_lea.sflag [#allocation4], %s1545_s29  ;;  %s1373_s18 = sshra.s32 %s1102_s15, 4  ;;  %s1374_s18 = int_to_ptr.hbm [resolvable:$true] %s1373_s18 }
  0x33   : > { %v1579_v15 = vsub.f32 %v243_v7, %v1574_v12  ;;  %v1596_v32 = vsub.f32 %v245_v16, %v1583_v23  ;;  %s1375_s19 = scalar_lea.hbm %s1374_s18, 4  ;;  %s1379_s22 = scalar_lea.hbm %s1752_s2, 8 }
  0x34   : > { %p1376_p1 = scmp.ne.s32.totalorder %s1374_s18, %s1375_s19  ;;  %p1380_p12 = scmp.lt.s32.totalorder %s1374_s18, %s1752_s2 }
  0x35   : > { %v1586_v26 = vand.u32 4294901760, %v1579_v15  ;;  %v1606_v44 = vand.u32 4294901760, %v1596_v32  ;;  %p1381_p8 = scmp.lt.s32.totalorder %s1379_s22, %s1375_s19 }
  0x36   : > { %p1377_p3 = pnand %p1376_p1, %p1514_p13 }
  0x37   : > { %v268_v33 = vsub.f32 %v1579_v15, %v1586_v26  ;;  %v276_v54 = vsub.f32 %v1596_v32, %v1606_v44  ;;  %p1382_p7 = por %p1381_p8, %p1380_p12 }
  0x38   : > { %211 = vperm.xlu1 %1261, %v1563_v3   ;;  %185 = vperm.xlu0 %1260, %v1563_v3   ;;  %p1378_p5 = pneg %p1377_p3 }
  0x39   : > { %v1603_v42 = vand.u32 4294901760, %v268_v33  ;;  %v1615_v61 = vand.u32 4294901760, %v276_v54  ;;  %v1438_v33 = vmov 20  }
  0x3a   : > { %p1383_p9 = pnand %p1382_p7, %p1378_p5 }
  0xa2   : > { %v1572_v8 = vpop.permute.xlu1 %215  ;;  %v191_v9 = vpop.permute.xlu0 %190 }
  0xa3   : > { %v206_v10 = vmul.f32 %v194_v5, %v191_v9  ;;  %v207_v11 = vmul.f32 %v195_v6, %v191_v9  ;;  %v208_v30 = vmul.f32 %v196_v20, %v191_v9  ;;  %v209_v52 = vmul.f32 %v197_v41, %v191_v9 }
  0xa5   : > { %v222_v13 = vadd.f32 %v1572_v8, %v206_v10  ;;  %v223_v14 = vadd.f32 %v1572_v8, %v207_v11  ;;  %v224_v38 = vadd.f32 %v1572_v8, %v208_v30  ;;  %v225_v59 = vadd.f32 %v1572_v8, %v209_v52 }
  0xa6   : > { %v1436_v8 = vmov 18   ;;  %v1437_v11 = vmov 19  }
  0xa7   : > { %1267 = vtanh.f32 %v222_v13  ;;  %1262 = vset.pattern.permute.xlu2 %v1436_v8  ;;  %1263 = vset.pattern.permute.xlu0 %v1437_v11 }
  0xa8   : > { %1269 = vtanh.f32 %v223_v14  ;;  %235 = vperm.xlu2 %1262, %v1563_v3   ;;  %1016 = vperm.xlu0 %1263, %v1563_v3  }
  0xa9   : > { %1264 = vset.pattern.permute.xlu1 %v1437_v11 }
  0xaa   : > { %v186_v17 = vpop.permute.xlu0 %185  ;;  %v212_v21 = vpop.permute.xlu1 %211  ;;  %1020 = vperm.xlu1 %1264, %v1559_v2  }
  0xab   : > { %v202_v18 = vmul.f32 %v194_v5, %v186_v17  ;;  %v203_v19 = vmul.f32 %v195_v6, %v186_v17  ;;  %v204_v35 = vmul.f32 %v196_v20, %v186_v17  ;;  %v205_v56 = vmul.f32 %v197_v41, %v186_v17 }
  0xad   : > { %v1268_v22 = vpop.eup %1267  ;;  %v218_v24 = vadd.f32 %v212_v21, %v202_v18  ;;  %v219_v25 = vadd.f32 %v212_v21, %v203_v19  ;;  %v220_v46 = vadd.f32 %v212_v21, %v204_v35  ;;  %v221_v0 = vadd.f32 %v212_v21, %v205_v56 }
  0xae   : > { %v1270_v27 = vpop.eup %1269  ;;  %v1588_v28 = vand.u32 4294901760, %v1268_v22 }
  0xaf   : > { %1271 = vtanh.f32 %v218_v24  ;;  %v1590_v29 = vand.u32 4294901760, %v1270_v27 }
  0xb0   : > { %1273 = vtanh.f32 %v219_v25  ;;  %262 = vmatpush.msra.mxu0 %v1588_v28  ;;  %363 = vmatpush.msra.mxu3 %v1588_v28  ;;  %v297_v31 = vsub.f32 %v1268_v22, %v1588_v28 }
  0xb1   : > { %v487_v34 = vsub.f32 %v1270_v27, %v1590_v29  ;;  %1275 = vtanh.f32 %v224_v38  ;;  %239 = vperm.xlu2 %1262, %v1559_v2   ;;  %1266 = vset.pattern.permute.xlu0 %v1438_v33 }
  0xb2   : > { %333 = vmatpush.msra.mxu2 %v297_v31  ;;  %v298_v36 = vand.u32 4294901760, %v297_v31  ;;  %1277 = vtanh.f32 %v220_v46 }
  0xb3   : > { %v488_v37 = vand.u32 4294901760, %v487_v34  ;;  %1279 = vtanh.f32 %v225_v59 }
  0xb4   : > { %v299_v39 = vsub.f32 %v297_v31, %v298_v36  ;;  %1281 = vtanh.f32 %v221_v0 }
  0xb5   : > { %v1272_v40 = vpop.eup %1271  ;;  %v489_v43 = vsub.f32 %v487_v34, %v488_v37 }
  0xb6   : > { %v1274_v45 = vpop.eup %1273  ;;  %v263_v47 = vand.u32 4294901760, %v1272_v40  ;;  %v300_v48 = vand.u32 4294901760, %v299_v39 }
  0xb7   : > { %v490_v49 = vand.u32 4294901760, %v489_v43  ;;  %v453_v50 = vand.u32 4294901760, %v1274_v45  ;;  %v1276_v62 = vpop.eup %1275 }
  0xb8   : > { %264 = vmatpush.msra.mxu0 %v263_v47  ;;  %301 = vmatpush.msra.mxu1 %v300_v48  ;;  %v303_v51 = vsub.f32 %v1272_v40, %v263_v47  ;;  %v1278_v4 = vpop.eup %1277  ;;  %v1618_v5 = vand.u32 4294901760, %v1276_v62 }
  0xb9   : > { %365 = vmatpush.msra.mxu3 %v263_v47  ;;  %270 = vmatmul.f32.vlgmr.msra.gmra.mxu0 %v1603_v42  ;;  %v493_v53 = vsub.f32 %v1274_v45, %v453_v50  ;;  %v1623_v6 = vand.u32 4294901760, %v1278_v4  ;;  %v1280_v9 = vpop.eup %1279 }
  0xba   : > { %369 = vmatmul.f32.vlgmr.msra.gmra.mxu3 %v1586_v26  ;;  %396 = vmatpush.msrb.mxu0 %v298_v36  ;;  %v304_v55 = vand.u32 4294901760, %v303_v51  ;;  %v677_v7 = vsub.f32 %v1276_v62, %v1618_v5  ;;  %v1282_v13 = vpop.eup %1281  ;;  %v831_v16 = vand.u32 4294901760, %v1280_v9 }
  0xbb   : > { %491 = vmatpush.msrb.mxu3 %v490_v49  ;;  %336 = vmatpush.msra.mxu2 %v303_v51  ;;  %v494_v57 = vand.u32 4294901760, %v493_v53  ;;  %v683_v10 = vsub.f32 %v1278_v4, %v1623_v6  ;;  %v833_v18 = vand.u32 4294901760, %v1282_v13 }
  0xbc   : > { %339 = vmatmul.f32.vlgmr.msra.gmra.mxu2 %v1579_v15  ;;  %400 = vmatpush.msrb.mxu0 %v304_v55  ;;  %v305_v58 = vsub.f32 %v303_v51, %v304_v55  ;;  %v678_v14 = vand.u32 4294901760, %v677_v7  ;;  %v867_v20 = vsub.f32 %v1280_v9, %v831_v16 }
  0xbd   : > { %452 = vmatpush.msrb.mxu2 %v1590_v29  ;;  %v495_v60 = vsub.f32 %v493_v53, %v494_v57  ;;  %v684_v17 = vand.u32 4294901760, %v683_v10  ;;  %v873_v22 = vsub.f32 %v1282_v13, %v833_v18  ;;  %1265 = vset.pattern.permute.xlu2 %v1438_v33 }
  0xbe   : > { %523 = vmatpush.msra.mxu0 %v487_v34  ;;  %v306_v63 = vand.u32 4294901760, %v305_v58  ;;  %v679_v19 = vsub.f32 %v677_v7, %v678_v14  ;;  %v868_v25 = vand.u32 4294901760, %v867_v20  ;;  %1060 = vperm.xlu2 %1265, %v1563_v3  }
  0xbf   : > { %454 = vmatpush.msrb.mxu2 %v453_v50  ;;  %v496_v1 = vand.u32 4294901760, %v495_v60  ;;  %v685_v21 = vsub.f32 %v683_v10, %v684_v17 }
  0xc0   : > { %526 = vmatpush.msra.mxu0 %v493_v53  ;;  %307 = vmatpush.msra.mxu1 %v306_v63  ;;  %v680_v24 = vand.u32 4294901760, %v679_v19 }
  0xc1   : > { %586 = vmatpush.msra.mxu2 %v488_v37  ;;  %497 = vmatpush.msrb.mxu3 %v496_v1  ;;  %v686_v27 = vand.u32 4294901760, %v685_v21 }
  0xc2   : > { %278 = vmatmul.f32.gmra.mxu0 %v1615_v61  ;;  %309 = vmatmul.f32.vlgmr.msra.gmra.mxu1 %v1574_v12 }
  0xc3   : > { %590 = vmatpush.msra.mxu2 %v494_v57  ;;  %375 = vmatmul.f32.gmra.mxu3 %v1606_v44 }
  0xc4   : > { %425 = vmatpush.msrb.mxu1 %v1588_v28  ;;  %615 = vmatpush.msra.mxu3 %v1590_v29  ;;  %v874_v28 = vand.u32 4294901760, %v873_v22 }
  0xc5   : > { %344 = vmatmul.f32.gmra.mxu2 %v1596_v32 }
  0xc6   : > { %427 = vmatpush.msrb.mxu1 %v263_v47  ;;  %617 = vmatpush.msra.mxu3 %v453_v50  ;;  %v875_v30 = vsub.f32 %v873_v22, %v874_v28 }
  0xc8   : > { %553 = vmatpush.msra.mxu1 %v1590_v29  ;;  %v869_v29 = vsub.f32 %v867_v20, %v868_v25  ;;  %v876_v31 = vand.u32 4294901760, %v875_v30 }
  0xca   : > { %555 = vmatpush.msra.mxu1 %v453_v50  ;;  %402 = vmatmul.f32.vlgmr.msrb.gmra.mxu0 %v1574_v12  ;;  %v870_v2 = vand.u32 4294901760, %v869_v29 }
  0xcb   : > { %313 = vmatmul.f32.gmra.mxu1 %v1583_v23  ;;  %642 = vmatpush.msrb.mxu0 %v1618_v5 }
  0xcc   : > { %499 = vmatmul.f32.vlgmr.msrb.gmra.mxu3 %v1574_v12 }
  0xcd   : > { %743 = vmatpush.msrb.mxu3 %v1618_v5  ;;  %460 = vmatmul.f32.vlgmr.msrb.gmra.mxu2 %v1603_v42 }
  0xce   : > { %644 = vmatpush.msrb.mxu0 %v1623_v6  ;;  %713 = vmatpush.msrb.mxu2 %v677_v7 }
  0xcf   : > { %745 = vmatpush.msrb.mxu3 %v1623_v6 }
  0xd0   : > { %716 = vmatpush.msrb.mxu2 %v683_v10 }
  0xd2   : > { %406 = vmatmul.f32.gmra.mxu0 %v1583_v23 }
  0xd3   : > { %429 = vmatmul.f32.vlgmr.msrb.gmra.mxu1 %v1574_v12 }
  0xd4   : > { %503 = vmatmul.f32.gmra.mxu3 %v1583_v23  ;;  %681 = vmatpush.msrb.mxu1 %v680_v24 }
  0xd5   : > { %468 = vmatmul.f32.gmra.mxu2 %v1615_v61 }
  0xd6   : > { %687 = vmatpush.msrb.mxu1 %v686_v27 }
  0xda   : > { %529 = vmatmul.f32.vlgmr.msra.gmra.mxu0 %v1579_v15 }
  0xdb   : > { %433 = vmatmul.f32.gmra.mxu1 %v1583_v23  ;;  %776 = vmatpush.msra.mxu0 %v678_v14 }
  0xdc   : > { %619 = vmatmul.f32.vlgmr.msra.gmra.mxu3 %v1574_v12 }
  0xdd   : > { %871 = vmatpush.msra.mxu3 %v870_v2  ;;  %592 = vmatmul.f32.vlgmr.msra.gmra.mxu2 %v1574_v12 }
  0xde   : > { %780 = vmatpush.msra.mxu0 %v684_v17  ;;  %832 = vmatpush.msra.mxu2 %v831_v16 }
  0xdf   : > { %877 = vmatpush.msra.mxu3 %v876_v31 }
  0xe0   : > { %834 = vmatpush.msra.mxu2 %v833_v18 }
  0xe2   : > { %534 = vmatmul.f32.gmra.mxu0 %v1596_v32 }
  0xe3   : > { %559 = vmatmul.f32.vlgmr.msra.gmra.mxu1 %v1586_v26 }
  0xe4   : > { %623 = vmatmul.f32.gmra.mxu3 %v1583_v23  ;;  %805 = vmatpush.msra.mxu1 %v1618_v5 }
  0xe5   : > { %596 = vmatmul.f32.gmra.mxu2 %v1583_v23 }
  0xe6   : > { %807 = vmatpush.msra.mxu1 %v1623_v6 }
  0xea   : > { %650 = vmatmul.f32.vlgmr.msrb.gmra.mxu0 %v1603_v42 }
  0xeb   : > { %565 = vmatmul.f32.gmra.mxu1 %v1606_v44  ;;  %903 = vmatpush.msrb.mxu0 %v867_v20 }
  0xec   : > { %749 = vmatmul.f32.vlgmr.msrb.gmra.mxu3 %v1586_v26 }
  0xed   : > { %995 = vmatpush.msrb.mxu3 %v831_v16  ;;  %719 = vmatmul.f32.vlgmr.msrb.gmra.mxu2 %v1579_v15 }
  0xee   : > { %906 = vmatpush.msrb.mxu0 %v873_v22  ;;  %966 = vmatpush.msrb.mxu2 %v868_v25 }
  0xef   : > { %997 = vmatpush.msrb.mxu3 %v833_v18 }
  0xf0   : > { %970 = vmatpush.msrb.mxu2 %v874_v28 }
  0xf2   : > { %658 = vmatmul.f32.gmra.mxu0 %v1615_v61 }
  0xf3   : > { %689 = vmatmul.f32.vlgmr.msrb.gmra.mxu1 %v1574_v12 }
  0xf4   : > { %933 = vmatpush.msrb.mxu1 %v831_v16  ;;  %755 = vmatmul.f32.gmra.mxu3 %v1606_v44 }
  0xf5   : > { %724 = vmatmul.f32.gmra.mxu2 %v1596_v32 }
  0xf6   : > { %935 = vmatpush.msrb.mxu1 %v833_v18 }
  0xfa   : > { %782 = vmatmul.f32.vlgmr.msra.gmra.mxu0 %v1574_v12 }
  0xfb   : > { %693 = vmatmul.f32.gmra.mxu1 %v1583_v23 }
  0xfc   : > { %879 = vmatmul.f32.vlgmr.msra.gmra.mxu3 %v1574_v12 }
  0xfd   : > { %840 = vmatmul.f32.vlgmr.msra.gmra.mxu2 %v1603_v42 }
 0x102   : > { %786 = vmatmul.f32.gmra.mxu0 %v1583_v23  ;;  %v1682_v34 = vpop.permute.xlu2 %235 }
 0x103   : > { %809 = vmatmul.f32.vlgmr.msra.gmra.mxu1 %v1574_v12 }
 0x104   : > { %883 = vmatmul.f32.gmra.mxu3 %v1583_v23 }
 0x105   : > { %848 = vmatmul.f32.gmra.mxu2 %v1615_v61 }
 0x10a   : > { %909 = vmatmul.f32.vlgmr.msrb.gmra.mxu0 %v1579_v15 }
 0x10b   : > { %813 = vmatmul.f32.gmra.mxu1 %v1583_v23  ;;  %v1685_v39 = vpop.permute.xlu2 %239 }
 0x10c   : > { %999 = vmatmul.f32.vlgmr.msrb.gmra.mxu3 %v1574_v12 }
 0x10d   : > { %972 = vmatmul.f32.vlgmr.msrb.gmra.mxu2 %v1574_v12 }
 0x112   : > { %914 = vmatmul.f32.gmra.mxu0 %v1596_v32 }
 0x113   : > { %939 = vmatmul.f32.vlgmr.msrb.gmra.mxu1 %v1586_v26 }
 0x114   : > { %1003 = vmatmul.f32.gmra.mxu3 %v1583_v23 }
 0x115   : > { %976 = vmatmul.f32.gmra.mxu2 %v1583_v23 }
 0x11a   : > { %v1689_v61 = vpop.permute.xlu0 %1016 }
 0x11b   : > { %945 = vmatmul.f32.gmra.mxu1 %v1606_v44 }
 0x11c   : > { %v1691_v62 = vpop.permute.xlu1 %1020 }
 0x136   : > { %v271_v3 = vpop.f32.mrf.mxu0 }
 0x137   : > { %v272_v15 = vadd.f32 %v271_v3, %v1682_v34 }
 0x13d   : > { %v370_v35 = vpop.f32.mrf.mxu3 }
 0x13f   : > { %v279_v36 = vpop.f32.mrf.mxu0  ;;  %v310_v37 = vpop.f32.mrf.mxu1 }
 0x140   : > { %v340_v38 = vpop.f32.mrf.mxu2  ;;  %v311_v12 = vadd.f32 %v310_v37, %v272_v15  ;;  %v280_v40 = vadd.f32 %v279_v36, %v1685_v39 }
 0x142   : > { %v341_v32 = vadd.f32 %v340_v38, %v311_v12 }
 0x144   : > { %v371_v26 = vadd.f32 %v370_v35, %v341_v32 }
 0x146   : > { %v376_v23 = vpop.f32.mrf.mxu3 }
 0x147   : > { %v403_v41 = vpop.f32.mrf.mxu0 }
 0x148   : > { %v314_v42 = vpop.f32.mrf.mxu1  ;;  %v404_v43 = vadd.f32 %v403_v41, %v371_v26  ;;  %v345_v44 = vpop.f32.mrf.mxu2 }
 0x149   : > { %v315_v45 = vadd.f32 %v314_v42, %v280_v40 }
 0x14b   : > { %v346_v46 = vadd.f32 %v345_v44, %v315_v45 }
 0x14d   : > { %v377_v47 = vadd.f32 %v376_v23, %v346_v46 }
 0x14f   : > { %v407_v48 = vpop.f32.mrf.mxu0  ;;  %v500_v49 = vpop.f32.mrf.mxu3 }
 0x150   : > { %v408_v50 = vadd.f32 %v407_v48, %v377_v47  ;;  %v430_v51 = vpop.f32.mrf.mxu1  ;;  %v461_v52 = vpop.f32.mrf.mxu2 }
 0x151   : > { %v431_v53 = vadd.f32 %v430_v51, %v404_v43  ;;  %v462_v54 = vadd.f32 %v461_v52, %v1682_v34 }
 0x153   : > { %v501_v55 = vadd.f32 %v500_v49, %v462_v54  ;;  %1283 = vtanh.f32 %v431_v53 }
 0x157   : > { %v530_v56 = vpop.f32.mrf.mxu0  ;;  %v504_v57 = vpop.f32.mrf.mxu3 }
 0x158   : > { %v434_v58 = vpop.f32.mrf.mxu1  ;;  %v469_v59 = vpop.f32.mrf.mxu2  ;;  %v531_v0 = vadd.f32 %v530_v56, %v501_v55 }
 0x159   : > { %v435_v60 = vadd.f32 %v434_v58, %v408_v50  ;;  %v1284_v63 = vpop.eup %1283  ;;  %v470_v8 = vadd.f32 %v469_v59, %v1685_v39  ;;  %v1700_v59 = vpop.permute.xlu2 %1060 }
 0x15a   : > { %v1023_v10 = vmul.f32 %v1284_v63, %v1689_v61 }
 0x15b   : > { %1285 = vtanh.f32 %v435_v60  ;;  %v505_v14 = vadd.f32 %v504_v57, %v470_v8 }
 0x15f   : > { %v535_v1 = vpop.f32.mrf.mxu0  ;;  %v620_v4 = vpop.f32.mrf.mxu3 }
 0x160   : > { %v560_v5 = vpop.f32.mrf.mxu1  ;;  %v593_v6 = vpop.f32.mrf.mxu2  ;;  %v536_v17 = vadd.f32 %v535_v1, %v505_v14 }
 0x161   : > { %v1286_v7 = vpop.eup %1285  ;;  %v561_v9 = vadd.f32 %v560_v5, %v531_v0 }
 0x162   : > { %v1027_v11 = vmul.f32 %v1286_v7, %v1691_v62 }
 0x163   : > { %v594_v16 = vadd.f32 %v593_v6, %v561_v9 }
 0x164   : > { %v1031_v13 = vadd.f32 %v1027_v11, %v1023_v10 }
 0x165   : > { %v621_v22 = vadd.f32 %v620_v4, %v594_v16 }
 0x166   : > { %v1032_v30 = vrot.slane %v1031_v13, 4 }
 0x167   : > { %v651_v18 = vpop.f32.mrf.mxu0  ;;  %v624_v19 = vpop.f32.mrf.mxu3  ;;  %1287 = vtanh.f32 %v621_v22 }
 0x168   : > { %v566_v20 = vpop.f32.mrf.mxu1  ;;  %v597_v21 = vpop.f32.mrf.mxu2  ;;  %v1033_v3 = vadd.f32 %v1032_v30, %v1031_v13  ;;  %v652_v41 = vadd.f32 %v651_v18, %v1682_v34 }
 0x169   : > { %v567_v24 = vadd.f32 %v566_v20, %v536_v17 }
 0x16a   : > { %v1034_v32 = vrot.slane %v1033_v3, 2 }
 0x16b   : > { %v598_v25 = vadd.f32 %v597_v21, %v567_v24 }
 0x16c   : > { %v1035_v43 = vadd.f32 %v1034_v32, %v1033_v3 }
 0x16d   : > { %v625_v27 = vadd.f32 %v624_v19, %v598_v25  ;;  %v1288_v33 = vpop.eup %1287 }
 0x16e   : > { %v1024_v35 = vmul.f32 %v1288_v33, %v1689_v61  ;;  %v1036_v50 = vrot.slane %v1035_v43, 1 }
 0x16f   : > { %1289 = vtanh.f32 %v625_v27  ;;  %v659_v28 = vpop.f32.mrf.mxu0  ;;  %v750_v29 = vpop.f32.mrf.mxu3 }
 0x170   : > { %v690_v2 = vpop.f32.mrf.mxu1  ;;  %v720_v31 = vpop.f32.mrf.mxu2  ;;  %v660_v23 = vadd.f32 %v659_v28, %v1685_v39  ;;  %v1037_v57 = vadd.f32 %v1036_v50, %v1035_v43 }
 0x171   : > { %v691_v45 = vadd.f32 %v690_v2, %v652_v41 }
 0x172   : > { %v1063_v6 = vadd.f32 %v1700_v59, %v1037_v57 }
 0x173   : > { %v721_v54 = vadd.f32 %v720_v31, %v691_v45 }
 0x175   : > { %v1290_v15 = vpop.eup %1289  ;;  %v751_v60 = vadd.f32 %v750_v29, %v721_v54 }
 0x176   : > { %v1028_v36 = vmul.f32 %v1290_v15, %v1691_v62 }
 0x177   : > { %v783_v37 = vpop.f32.mrf.mxu0  ;;  %v756_v38 = vpop.f32.mrf.mxu3 }
 0x178   : > { %v1038_v12 = vadd.f32 %v1028_v36, %v1024_v35  ;;  %v694_v26 = vpop.f32.mrf.mxu1  ;;  %v725_v40 = vpop.f32.mrf.mxu2  ;;  %v784_v1 = vadd.f32 %v783_v37, %v751_v60 }
 0x179   : > { %v695_v46 = vadd.f32 %v694_v26, %v660_v23 }
 0x17a   : > { %v1039_v42 = vrot.slane %v1038_v12, 4 }
 0x17b   : > { %v726_v55 = vadd.f32 %v725_v40, %v695_v46 }
 0x17c   : > { %v1040_v44 = vadd.f32 %v1039_v42, %v1038_v12 }
 0x17d   : > { %v757_v63 = vadd.f32 %v756_v38, %v726_v55 }
 0x17e   : > { %v1041_v47 = vrot.slane %v1040_v44, 2 }
 0x17f   : > { %v787_v48 = vpop.f32.mrf.mxu0  ;;  %v880_v49 = vpop.f32.mrf.mxu3 }
 0x180   : > { %v1042_v51 = vadd.f32 %v1041_v47, %v1040_v44  ;;  %v810_v52 = vpop.f32.mrf.mxu1  ;;  %v841_v53 = vpop.f32.mrf.mxu2  ;;  %v788_v4 = vadd.f32 %v787_v48, %v757_v63 }
 0x181   : > { %v811_v10 = vadd.f32 %v810_v52, %v784_v1  ;;  %v842_v11 = vadd.f32 %v841_v53, %v1682_v34 }
 0x182   : > { %v1043_v56 = vrot.slane %v1042_v51, 1 }
 0x183   : > { %v881_v17 = vadd.f32 %v880_v49, %v842_v11 }
 0x184   : > { %v1044_v58 = vadd.f32 %v1043_v56, %v1042_v51 }
 0x186   : > { %v1064_v0 = vadd.f32 %v1700_v59, %v1044_v58 }
 0x187   : > { %v884_v5 = vpop.f32.mrf.mxu3  ;;  %v910_v16 = vpop.f32.mrf.mxu0 }
 0x188   : > { %v1071_v7 = vrot.slane %v1064_v0, 7  ;;  %v814_v8 = vpop.f32.mrf.mxu1  ;;  %v849_v9 = vpop.f32.mrf.mxu2  ;;  %v911_v18 = vadd.f32 %v910_v16, %v881_v17 }
 0x189   : > { %v815_v13 = vadd.f32 %v814_v8, %v788_v4  ;;  %v850_v24 = vadd.f32 %v849_v9, %v1685_v39 }
 0x18a   : > { %v1705_v14 = vsel %vm1074_vm1, %v1063_v6, %v1071_v7 }
 0x18b   : > { %1291 = vtanh.f32 %v815_v13  ;;  %v885_v34 = vadd.f32 %v884_v5, %v850_v24 }
 0x18c   : > { %1293 = vtanh.f32 %v811_v10 }
 0x18f   : > { %v1000_v19 = vpop.f32.mrf.mxu3  ;;  %v915_v29 = vpop.f32.mrf.mxu0 }
 0x190   : > { %v940_v20 = vpop.f32.mrf.mxu1  ;;  %v973_v21 = vpop.f32.mrf.mxu2  ;;  %v916_v31 = vadd.f32 %v915_v29, %v885_v34 }
 0x191   : > { %v1292_v22 = vpop.eup %1291  ;;  %v941_v25 = vadd.f32 %v940_v20, %v911_v18 }
 0x192   : > { %v1294_v27 = vpop.eup %1293  ;;  %v1029_v28 = vmul.f32 %v1292_v22, %v1691_v62 }
 0x193   : > { %v974_v30 = vadd.f32 %v973_v21, %v941_v25  ;;  %v1025_v2 = vmul.f32 %v1294_v27, %v1689_v61 }
 0x195   : > { %v1045_v33 = vadd.f32 %v1029_v28, %v1025_v2  ;;  %v1001_v35 = vadd.f32 %v1000_v19, %v974_v30 }
 0x197   : > { %v1004_v37 = vpop.f32.mrf.mxu3  ;;  %v1046_v12 = vrot.slane %v1045_v33, 4  ;;  %1295 = vtanh.f32 %v1001_v35 }
 0x198   : > { %v946_v3 = vpop.f32.mrf.mxu1  ;;  %v977_v15 = vpop.f32.mrf.mxu2 }
 0x199   : > { %v947_v36 = vadd.f32 %v946_v3, %v916_v31  ;;  %v1047_v32 = vadd.f32 %v1046_v12, %v1045_v33 }
 0x19b   : > { %v978_v38 = vadd.f32 %v977_v15, %v947_v36  ;;  %v1048_v40 = vrot.slane %v1047_v32, 2 }
 0x19d   : > { %v1005_v39 = vadd.f32 %v1004_v37, %v978_v38  ;;  %v1296_v26 = vpop.eup %1295  ;;  %v1049_v43 = vadd.f32 %v1048_v40, %v1047_v32 }
 0x19e   : > { %v1026_v23 = vmul.f32 %v1296_v26, %v1689_v61  ;;  %v1081_v61 = vlaneseq }
 0x19f   : > { %1297 = vtanh.f32 %v1005_v39  ;;  %v1050_v46 = vrot.slane %v1049_v43, 1 }
 0x1a0   : > { %vm1083_vm4 = vcmp.lt.s32.totalorder %v1081_v61, 512 }
 0x1a1   : > { %v1051_v49 = vadd.f32 %v1050_v46, %v1049_v43 }
 0x1a3   : > { %v1065_v53 = vadd.f32 %v1700_v59, %v1051_v49 }
 0x1a5   : > { %v1298_v41 = vpop.eup %1297  ;;  %v1072_v54 = vrot.slane %v1065_v53, 6 }
 0x1a6   : > { %v1030_v42 = vmul.f32 %v1298_v41, %v1691_v62 }
 0x1a8   : > { %v1052_v44 = vadd.f32 %v1030_v42, %v1026_v23 }
 0x1aa   : > { %v1053_v45 = vrot.slane %v1052_v44, 4 }
 0x1ac   : > { %v1054_v47 = vadd.f32 %v1053_v45, %v1052_v44 }
 0x1ae   : > { %v1055_v48 = vrot.slane %v1054_v47, 2 }
 0x1b0   : > { %v1056_v50 = vadd.f32 %v1055_v48, %v1054_v47 }
 0x1b2   : > { %v1057_v51 = vrot.slane %v1056_v50, 1 }
 0x1b4   : > { %v1058_v52 = vadd.f32 %v1057_v51, %v1056_v50 }
 0x1b6   : > { %v1066_v62 = vadd.f32 %v1700_v59, %v1058_v52 }
 0x1b8   : > { %v1073_v55 = vrot.slane %v1066_v62, 5 }
 0x1ba   : > { %v1077_v56 = vsel %vm1076_vm2, %v1072_v54, %v1073_v55 }
 0x1bb   : > { %v1079_v57 = vsel %vm1078_vm3, %v1705_v14, %v1077_v56 }
 0x1bc   : > { %1085 = vst.msk [vmem:[%s177_s13] sm:$0xf] %vm1083_vm4, %v1079_v57 }
 0x1bd   : > { %1386 = shalt.err (!%p1383_p9)
}
 0x1be   : > { %1202 = dma.vmem_to_hbm [thread:$0]  (%p1514_p13), %s1100_s14, 64, %s1102_s15, %s1087_s16  }
 0x1bf PF: > { %s1113_s3 = sand.u32 1, %s1417_s9   ;;  %p1758_p10 = scmp.ge.s32.totalorder %s1429_s12, 2 }
 0x1c0   : > { %s1114_s29 = scalar_lea.sflag [#allocation4], %s1113_s3 }
 0x1c1   : > { %p1213_p11 = pnand %p1758_p10, %p1519_p4 }
 0x1c3   : > { %p1214_p0 = pneg %p1213_p11 }
 0x1c5   : > { %1412 = dma.done.wait (%p1214_p0), %s1114_s29, 64  }
 0x1c6   : > { %1414 = vsyncadd (%p1214_p0), %s1114_s29, 4294967232  ;;  %p16_p2 = scmp.ge.s32.totalorder %s1494_s23, 4   ;;  %s1759_s9 = smov %s1421_s10 }
 0x1c7   : > { %s1760_s10 = smov %s1425_s11  ;;  %s1761_s11 = smov %s1506_s26 }
 0x1c8   : > { %s1762_s12 = smov %s1494_s23  ;;  %18 = sbr.rel (!%p16_p2) target bundleno = 6 (0x6), region = 77 }
 0x1cd   :  { %1120 = vsyncpa [#allocation3], 1 }
 0x1ce   :  { %1122 = vsyncpa [#allocation3 + $0x1], 1 }
 0x1cf   :  { %1123 = vsyncpa [#allocation6], 1 }
 0x1d0   :  { %1124 = vsyncpa [#allocation4], 1 }
 0x1d1   :  { %1126 = vsyncpa [#allocation4 + $0x1], 1 }

</bundles_post_ra>
